<compile_context>
chip_gen: v6e
topology: v6e:2x2x1
jax: 0.10.0
libtpu: 0.0.40
codegen_flags: <defaults>
</compile_context>

<pallas_src>
import jax
import jax.numpy as jnp
from jax.experimental import pallas as pl
from jax.experimental.pallas import tpu as pltpu

_IN = 320        # Linear(320, 50) input features
_HID = 50        # true hidden width
_OUT = 10        # true output width
_HID_PAD = 128   # lane-aligned hidden width (zero-padded)
_OUT_PAD = 128   # lane-dense output width (zero-padded, unmasked stores)


def _cdiv(a, b):
    return -(-a // b)


def _round_up(n, m):
    return ((n + m - 1) // m) * m


def _choose_tile(batch, block_b):
    """Batch tile: multiple of 8, <= block_b, balanced, >=2 grid steps if possible."""
    if batch <= 8:
        return 8
    n_tiles = max(2, _cdiv(batch, block_b))        # >=2 steps -> v7x megacore
    tb = _round_up(_cdiv(batch, n_tiles), 8)       # balanced tiles, <=7 rows waste
    return max(8, min(tb, block_b))


def _mlp_kernel(x_ref, w1_ref, b1_ref, w2_ref, b2_ref, o_ref):
    # In-kernel cast to bf16 (no-op if x already bf16); f32 MXU accumulation.
    x = x_ref[...].astype(jnp.bfloat16)
    h = jnp.dot(x, w1_ref[...], preferred_element_type=jnp.float32)   # [TB, 128]
    h = jnp.maximum(h + b1_ref[...], 0.0)                             # bias + ReLU (f32)
    # Dropout(p=0.5): identity in eval mode.
    y = jnp.dot(h.astype(jnp.bfloat16), w2_ref[...],
                preferred_element_type=jnp.float32)                   # [TB, 128]
    o_ref[...] = (y + b2_ref[...]).astype(o_ref.dtype)                # lane-dense bf16 store


def prepare_params(w1, b1, w2, b2):
    """One-time weight prep (hoisted out of the per-call wrapper).

    Torch-layout weights pre-transposed: w1 [320, 50], b1 [50] or [1, 50],
    w2 [50, 10], b2 [10] or [1, 10].  Hidden/output dims are zero-padded to
    128 (padded cols compute to exactly 0: ReLU(0 + 0) = 0), weights cast to
    bf16, biases kept f32 (added after f32 accumulation).
    """
    b1 = b1.reshape(1, -1)
    b2 = b2.reshape(1, -1)
    w1p = jnp.zeros((_IN, _HID_PAD), jnp.bfloat16).at[:, :_HID].set(
        w1.astype(jnp.bfloat16))
    b1p = jnp.zeros((1, _HID_PAD), jnp.float32).at[:, :_HID].set(
        b1.astype(jnp.float32))
    w2p = jnp.zeros((_HID_PAD, _OUT_PAD), jnp.bfloat16).at[:_HID, :_OUT].set(
        w2.astype(jnp.bfloat16))
    b2p = jnp.zeros((1, _OUT_PAD), jnp.float32).at[:, :_OUT].set(
        b2.astype(jnp.float32))
    return w1p, b1p, w2p, b2p


def classify_mnist_fwd(x, params, *, block_b=2048):
    """x: [B, 320] (f32 or bf16) -> logits [B, 10] f32.

    `params` is the tuple returned by prepare_params().
    """
    w1p, b1p, w2p, b2p = params
    B = x.shape[0]
    if B == 0:
        return jnp.zeros((0, _OUT), jnp.float32)

    tb = _choose_tile(B, block_b)
    grid = (pl.cdiv(B, tb),)   # ragged last block handled by Pallas (no row reduction)

    out = pl.pallas_call(
        _mlp_kernel,
        out_shape=jax.ShapeDtypeStruct((B, _OUT_PAD), jnp.bfloat16),
        grid=grid,
        in_specs=[
            pl.BlockSpec((tb, _IN), lambda i: (i, 0)),             # x: batch-tiled
            pl.BlockSpec((_IN, _HID_PAD), lambda i: (0, 0)),       # w1: VMEM-resident
            pl.BlockSpec((1, _HID_PAD), lambda i: (0, 0)),         # b1: resident
            pl.BlockSpec((_HID_PAD, _OUT_PAD), lambda i: (0, 0)),  # w2: resident
            pl.BlockSpec((1, _OUT_PAD), lambda i: (0, 0)),         # b2: resident
        ],
        out_specs=pl.BlockSpec((tb, _OUT_PAD), lambda i: (i, 0)),
        compiler_params=pltpu.CompilerParams(
            dimension_semantics=("parallel",),   # megacore sharding on v7x
        ),
    )(x, w1p, b1p, w2p, b2p)

    # Tiny [B, 10] slice + cast; downstream consumers may instead read the
    # padded bf16 [:, :10] view directly to skip this.
    return out[:B, :_OUT].astype(jnp.float32)


def init_params(key):
    """Deterministic init matching torch.nn.Linear default U(-1/sqrt(fan_in), +)."""
    k1, k2, k3, k4 = jax.random.split(key, 4)
    lim1 = 1.0 / jnp.sqrt(320.0)
    lim2 = 1.0 / jnp.sqrt(50.0)
    w1 = jax.random.uniform(k1, (320, 50), jnp.float32, -lim1, lim1)
    b1 = jax.random.uniform(k2, (1, 50), jnp.float32, -lim1, lim1)
    w2 = jax.random.uniform(k3, (50, 10), jnp.float32, -lim2, lim2)
    b2 = jax.random.uniform(k4, (1, 10), jnp.float32, -lim2, lim2)
    return w1, b1, w2, b2


def _reference(x, w1, b1, w2, b2):
    # Mirror the kernel's numerics: bf16-rounded operands/activations/logits,
    # f32 accumulation.
    hp = jax.lax.Precision.HIGHEST
    f32 = jnp.float32
    xb = x.astype(jnp.bfloat16).astype(f32)
    w1b = w1.astype(jnp.bfloat16).astype(f32)
    w2b = w2.astype(jnp.bfloat16).astype(f32)
    h = jnp.maximum(jnp.dot(xb, w1b, precision=hp) + b1.reshape(1, -1), 0.0)
    hb = h.astype(jnp.bfloat16).astype(f32)
    y = jnp.dot(hb, w2b, precision=hp) + b2.reshape(1, -1)
    return y.astype(jnp.bfloat16).astype(f32)


if __name__ == "__main__":
    key = jax.random.PRNGKey(0)
    kx, kp, kx2, kx3 = jax.random.split(key, 4)
    w1, b1, w2, b2 = init_params(kp)
    params = prepare_params(w1, b1, w2, b2)   # built once, reused per call

    tol = dict(atol=3e-2, rtol=3e-2)          # bf16-logit rounding headroom

    # Small-batch path (single tiny tile).
    B = 8
    x = jax.random.normal(kx, (B, _IN), jnp.float32)
    out = jax.block_until_ready(classify_mnist_fwd(x, params))
    ref = _reference(x, w1, b1, w2, b2)
    assert out.shape == (B, _OUT)
    assert jnp.allclose(out, ref, **tol), "mismatch vs reference (B=8)"

    # Multi-tile path, batch divides the tile (grid of 3 balanced tiles of 24).
    B2 = 72
    x2 = jax.random.normal(kx2, (B2, _IN), jnp.float32)
    out2 = jax.block_until_ready(classify_mnist_fwd(x2, params, block_b=32))
    ref2 = _reference(x2, w1, b1, w2, b2)
    assert out2.shape == (B2, _OUT)
    assert jnp.allclose(out2, ref2, **tol), "mismatch vs reference (B=72)"

    # Ragged path: last grid step only partially valid (exercises masked writeback).
    B3 = 70
    x3 = jax.random.normal(kx3, (B3, _IN), jnp.float32)
    out3 = jax.block_until_ready(classify_mnist_fwd(x3, params, block_b=32))
    ref3 = _reference(x3, w1, b1, w2, b2)
    assert out3.shape == (B3, _OUT)
    assert jnp.allclose(out3, ref3, **tol), "mismatch vs reference (B=70, ragged)"

    print("KERNEL_OK")
</pallas_src>

<mosaic_0001>
module attributes {stable_mosaic.version = 11 : i64} {
  func.func @_mlp_kernel(%arg0: i32, %arg1: memref<8x320xf32, #tpu.memory_space<vmem>>, %arg2: memref<320x128xbf16, #tpu.memory_space<vmem>>, %arg3: memref<1x128xf32, #tpu.memory_space<vmem>>, %arg4: memref<128x128xbf16, #tpu.memory_space<vmem>>, %arg5: memref<1x128xf32, #tpu.memory_space<vmem>>, %arg6: memref<8x128xbf16, #tpu.memory_space<vmem>>) attributes {dimension_semantics = [#tpu.dimension_semantics<parallel>], iteration_bounds = array<i64: 1>, scalar_prefetch = 0 : i64, scratch_operands = 0 : i64, tpu.core_type = #tpu.core_type<tc>, window_params = [{transform_indices = @transform_0, window_bounds = array<i64: 8, 320>}, {pipeline_mode = #tpu.pipeline_mode<synchronous>, transform_indices = @transform_1, window_bounds = array<i64: 320, 128>}, {pipeline_mode = #tpu.pipeline_mode<synchronous>, transform_indices = @transform_2, window_bounds = array<i64: 1, 128>}, {pipeline_mode = #tpu.pipeline_mode<synchronous>, transform_indices = @transform_3, window_bounds = array<i64: 128, 128>}, {pipeline_mode = #tpu.pipeline_mode<synchronous>, transform_indices = @transform_4, window_bounds = array<i64: 1, 128>}, {transform_indices = @transform_5, window_bounds = array<i64: 8, 128>}]} {
    %c0 = arith.constant 0 : index
    %c0_0 = arith.constant 0 : index
    %0 = vector.load %arg1[%c0, %c0_0] : memref<8x320xf32, #tpu.memory_space<vmem>>, vector<8x320xf32>
    %1 = arith.truncf %0 : vector<8x320xf32> to vector<8x320xbf16>
    %c0_1 = arith.constant 0 : index
    %c0_2 = arith.constant 0 : index
    %2 = vector.load %arg2[%c0_1, %c0_2] : memref<320x128xbf16, #tpu.memory_space<vmem>>, vector<320x128xbf16>
    %cst = arith.constant dense<0.000000e+00> : vector<8x128xf32>
    %3 = tpu.matmul %1, %2, %cst {dimension_numbers = #tpu.dot_dimension_numbers<[1], [0], [0], [1], [0, 0, 1, 1], [], []>} : vector<8x320xbf16>, vector<320x128xbf16>, vector<8x128xf32> -> vector<8x128xf32>
    %c0_3 = arith.constant 0 : index
    %c0_4 = arith.constant 0 : index
    %4 = vector.load %arg3[%c0_3, %c0_4] : memref<1x128xf32, #tpu.memory_space<vmem>>, vector<1x128xf32>
    %5 = vector.broadcast %4 : vector<1x128xf32> to vector<8x128xf32>
    %6 = arith.addf %3, %5 : vector<8x128xf32>
    %cst_5 = arith.constant 0.000000e+00 : f32
    %7 = vector.broadcast %cst_5 : f32 to vector<8x128xf32>
    %8 = arith.maximumf %6, %7 : vector<8x128xf32>
    %9 = arith.truncf %8 : vector<8x128xf32> to vector<8x128xbf16>
    %c0_6 = arith.constant 0 : index
    %c0_7 = arith.constant 0 : index
    %10 = vector.load %arg4[%c0_6, %c0_7] : memref<128x128xbf16, #tpu.memory_space<vmem>>, vector<128x128xbf16>
    %cst_8 = arith.constant dense<0.000000e+00> : vector<8x128xf32>
    %11 = tpu.matmul %9, %10, %cst_8 {dimension_numbers = #tpu.dot_dimension_numbers<[1], [0], [0], [1], [0, 0, 1, 1], [], []>} : vector<8x128xbf16>, vector<128x128xbf16>, vector<8x128xf32> -> vector<8x128xf32>
    %c0_9 = arith.constant 0 : index
    %c0_10 = arith.constant 0 : index
    %12 = vector.load %arg5[%c0_9, %c0_10] : memref<1x128xf32, #tpu.memory_space<vmem>>, vector<1x128xf32>
    %13 = vector.broadcast %12 : vector<1x128xf32> to vector<8x128xf32>
    %14 = arith.addf %11, %13 : vector<8x128xf32>
    %15 = arith.truncf %14 : vector<8x128xf32> to vector<8x128xbf16>
    %c0_11 = arith.constant 0 : index
    %c0_12 = arith.constant 0 : index
    %16 = vector.load %arg6[%c0_11, %c0_12] : memref<8x128xbf16, #tpu.memory_space<vmem>>, vector<8x128xbf16>
    tpu.vector_store %arg6[%c0_11, %c0_12], %15 {strides = array<i32>} : memref<8x128xbf16, #tpu.memory_space<vmem>>, vector<8x128xbf16>,
    return
  }
  func.func @transform_0(%arg0: i32) -> (i32, i32) {
    %c0_i32 = arith.constant 0 : i32
    %c0_i32_0 = arith.constant 0 : i32
    return %arg0, %c0_i32 : i32, i32
  }
  func.func @transform_1(%arg0: i32) -> (i32, i32) {
    %c0_i32 = arith.constant 0 : i32
    %c0_i32_0 = arith.constant 0 : i32
    %c0_i32_1 = arith.constant 0 : i32
    return %c0_i32, %c0_i32_0 : i32, i32
  }
  func.func @transform_2(%arg0: i32) -> (i32, i32) {
    %c0_i32 = arith.constant 0 : i32
    %c0_i32_0 = arith.constant 0 : i32
    %c0_i32_1 = arith.constant 0 : i32
    return %c0_i32, %c0_i32_0 : i32, i32
  }
  func.func @transform_3(%arg0: i32) -> (i32, i32) {
    %c0_i32 = arith.constant 0 : i32
    %c0_i32_0 = arith.constant 0 : i32
    %c0_i32_1 = arith.constant 0 : i32
    return %c0_i32, %c0_i32_0 : i32, i32
  }
  func.func @transform_4(%arg0: i32) -> (i32, i32) {
    %c0_i32 = arith.constant 0 : i32
    %c0_i32_0 = arith.constant 0 : i32
    %c0_i32_1 = arith.constant 0 : i32
    return %c0_i32, %c0_i32_0 : i32, i32
  }
  func.func @transform_5(%arg0: i32) -> (i32, i32) {
    %c0_i32 = arith.constant 0 : i32
    %c0_i32_0 = arith.constant 0 : i32
    return %arg0, %c0_i32 : i32, i32
  }
}

</mosaic_0001>

<bundles_post_ra>
// kernel: tpu_custom_call.1
= control target key start
LH: loop header
LB: loop body
LE: loop exit
PB: predicated region body
PF: predicated region fallthrough
CT: control target
= control target key end

     0   :  { %10 = vsyncpa [#allocation3], 0  ;;  %s742_s0 = inlined_call_operand.hbm [shape: f32[8,320], index: 0, kind: input, shape index: {}]   ;;  %s743_s1 = inlined_call_operand.hbm [shape: bf16[320,128], index: 1, kind: input, shape index: {}]   ;;  %s744_s2 = inlined_call_operand.vmem [shape: f32[1,128], index: 2, kind: input, shape index: {}]   ;;  %s745_s3 = inlined_call_operand.hbm [shape: bf16[128,128], index: 3, kind: input, shape index: {}]   ;;  %s746_s4 = inlined_call_operand.vmem [shape: f32[1,128], index: 4, kind: input, shape index: {}]   ;;  %s747_s5 = inlined_call_operand.hbm [shape: bf16[8,128], index: 5, kind: output, shape index: {}]  }
   0x1   :  { %11 = vsyncpa [#allocation6], 0 }
   0x2   :  { %12 = vsyncpa [#allocation4], 0  ;;  %s670_s18 = smov [#allocation5]  }
   0x3   :  { %s28_s19 = sshll.u32 %s670_s18, 4  ;;  %s29_s19 = int_to_ptr.vmem [resolvable:$true] %s28_s19 }
   0x4   :  { %s592_s20 = scalar_lea.vmem %s29_s19, 2560  ;;  %p597_p1 = scmp.lt.s32.totalorder %s29_s19, %s29_s19 }
   0x5   :  { %p593_p0 = scmp.ne.s32.totalorder %s29_s19, %s592_s20  ;;  %p598_p2 = scmp.lt.s32.totalorder %s592_s20, %s592_s20 }
   0x7   :  { %p599_p3 = por %p598_p2, %p597_p1 }
   0x9   :  { %p600_p4 = pnand %p599_p3, %p593_p0 }
   0xb   :  { %603 = shalt.err (!%p600_p4)
}
   0xc   :  { %s671_s21 = smov 64   ;;  %s672_s22 = smov 4  }
   0xd   :  { %34 = dma.hbm_to_vmem [thread:$0]  %s743_s1, 2560, %s29_s19, [#allocation6], %s671_s21, %s671_s21, %s672_s22  }
   0xe   :  { %s673_s25 = smov [#allocation2]   ;;  %s674_s27 = smov [#allocation7]  }
   0xf   :  { %s19_s26 = sshll.u32 %s673_s25, 4  ;;  %s42_s28 = sshll.u32 %s674_s27, 4  ;;  %s20_s26 = int_to_ptr.vmem [resolvable:$true] %s19_s26  ;;  %s43_s28 = int_to_ptr.vmem [resolvable:$true] %s42_s28 }
  0x10   :  { %s612_s29 = scalar_lea.vmem %s20_s26, 384  ;;  %p617_p6 = scmp.lt.s32.totalorder %s20_s26, %s20_s26 }
  0x11   :  { %p613_p5 = scmp.ne.s32.totalorder %s20_s26, %s612_s29  ;;  %p618_p7 = scmp.lt.s32.totalorder %s612_s29, %s612_s29 }
  0x13   :  { %p619_p8 = por %p618_p7, %p617_p6 }
  0x15   :  { %p620_p9 = pnand %p619_p8, %p613_p5 }
  0x17   :  { %623 = shalt.err (!%p620_p9)
}
  0x18   :  { %22 = dma.hbm_to_vmem [thread:$0]  %s742_s0, 384, %s20_s26, [#allocation3]  }
  0x19   :  { %s632_s7 = scalar_lea.vmem %s43_s28, 1024  ;;  %p637_p11 = scmp.lt.s32.totalorder %s43_s28, %s43_s28 }
  0x1a   :  { %p633_p10 = scmp.ne.s32.totalorder %s43_s28, %s632_s7  ;;  %p638_p12 = scmp.lt.s32.totalorder %s632_s7, %s632_s7 }
  0x1c   :  { %p639_p13 = por %p638_p12, %p637_p11 }
  0x1e   :  { %p640_p0 = pnand %p639_p13, %p633_p10 }
  0x20   :  { %643 = shalt.err (!%p640_p0)
}
  0x21   :  { %48 = dma.hbm_to_vmem [thread:$0]  %s745_s3, 1024, %s43_s28, [#allocation6], %s671_s21, %s671_s21, %s672_s22  }
  0x22   :  { %664 = dma.done.wait [#allocation3], 384  }
  0x23   :  { %665 = vsyncadd [#allocation3], 4294966912 }
  0x24   :  { %666 = dma.done.wait [#allocation6], 3584  }
  0x25   :  { %667 = vsyncadd [#allocation6], 4294963712  ;;  %v675_v0 = vmov 0.0   ;;  %vm676_vm0 = vmmov 0   ;;  %v556_v1 = vld [vmem:[#allocation5 + $0x78] sm:$0xff]   ;;  %v558_v3 = vld [vmem:[#allocation5 + $0x70] sm:$0xff]  }
  0x26   :  { %516 = vmatprep.subr.bf16.mxu1 %v675_v0  ;;  %524 = vmatprep.mubr.msk.bf16.mxu1 %vm676_vm0, %v675_v0  ;;  %v557_v2 = vld [vmem:[#allocation5 + $0x38] sm:$0xff]   ;;  %v559_v4 = vld [vmem:[#allocation5 + $0x30] sm:$0xff]   ;;  %v560_v5 = vld [vmem:[#allocation5 + $0x68] sm:$0xff]   ;;  %vm234_vm1 = vcmask 523264   ;;  %s677_s11 = smov [#allocation8]  }
  0x27   :  { %480 = vmatprep.subr.bf16.mxu0 %v556_v1  ;;  %v561_v6 = vld [vmem:[#allocation5 + $0x28] sm:$0xff]   ;;  %v562_v7 = vld [vmem:[#allocation5 + $0x60] sm:$0xff]   ;;  %v566_v8 = vld [vmem:[#allocation5 + $0x98] sm:$0xff]   ;;  %s439_s12 = sshll.u32 %s677_s11, 4  ;;  %s440_s12 = int_to_ptr.vmem [resolvable:$true] %s439_s12 }
  0x28   :  { %481 = vmatpush3.bf16.msra.mxu0 %v557_v2  ;;  %v563_v9 = vld [vmem:[#allocation5 + $0x20] sm:$0xff]   ;;  %v564_v10 = vld [vmem:[#allocation5 + $0x58] sm:$0xff]   ;;  %517 = vmatpush3.bf16.msra.mxu1 %v566_v8  ;;  %v569_v11 = vld [vmem:[#allocation5 + $0x90] sm:$0xff]   ;;  %p649_p2 = scmp.lt.s32.totalorder %s440_s12, %s440_s12 }
  0x29   :  { %482 = vmatprep.subr.bf16.mxu0 %v558_v3  ;;  %518 = vmatprep.subr.bf16.mxu1 %v675_v0  ;;  %v565_v12 = vld [vmem:[#allocation5 + $0x18] sm:$0xff]   ;;  %v567_v13 = vld [vmem:[#allocation5 + $0x50] sm:$0xff]   ;;  %v572_v14 = vld [vmem:[#allocation5 + $0x88] sm:$0xff]  }
  0x2a   :  { %v568_v15 = vld [vmem:[#allocation5 + $0x10] sm:$0xff]   ;;  %v570_v16 = vld [vmem:[#allocation5 + $0x48] sm:$0xff]   ;;  %v575_v17 = vld [vmem:[#allocation5 + $0x80] sm:$0xff]  }
  0x2b   :  { %v62_v18 = vld [vmem:[#allocation2 + $0x8] sm:$0xff]  ;;  %v63_v19 = vld [vmem:[#allocation2 + $0x10] sm:$0xff]  ;;  %v571_v21 = vld [vmem:[#allocation5 + $0x8] sm:$0xff]  }
  0x2c   :  { %483 = vmatpush3.bf16.msra.mxu0 %v559_v4  ;;  %519 = vmatpush3.bf16.msra.mxu1 %v569_v11  ;;  %v65_v20 = vpack.c.bf16 %v62_v18, %v62_v18  ;;  %v573_v22 = vld [vmem:[#allocation5 + $0x40] sm:$0xff]   ;;  %v66_v23 = vpack.c.bf16 %v63_v19, %v63_v19  ;;  %v576_v24 = vld [vmem:[#allocation7 + $0x38] sm:$0xff]   ;;  %v61_v26 = vld [vmem:[#allocation2] sm:$0xff] }
  0x2d   :  { %484 = vmatprep.subr.bf16.mxu0 %v560_v5  ;;  %520 = vmatprep.subr.bf16.mxu1 %v675_v0  ;;  %v574_v25 = vld [vmem:[#allocation5] sm:$0xff]   ;;  %v577_v27 = vld [vmem:[#allocation7 + $0x30] sm:$0xff]   ;;  %v64_v28 = vpack.c.bf16 %v61_v26, %v61_v26  ;;  %v578_v29 = vld [vmem:[#allocation7 + $0x28] sm:$0xff]  }
  0x2e   :  { %270 = vmatprep.mubr.bf16.mxu0 %v65_v20  ;;  %v579_v30 = vld [vmem:[#allocation7 + $0x20] sm:$0xff]   ;;  %v580_v31 = vld [vmem:[#allocation7 + $0x18] sm:$0xff]   ;;  %v581_v32 = vld [vmem:[#allocation7 + $0x10] sm:$0xff]  }
  0x2f   :  { %v582_v33 = vld [vmem:[#allocation7 + $0x8] sm:$0xff]   ;;  %v583_v34 = vld [vmem:[#allocation7] sm:$0xff]  }
  0x30   :  { %485 = vmatpush3.bf16.msra.mxu0 %v561_v6  ;;  %521 = vmatpush3.bf16.msra.mxu1 %v572_v14  ;;  %v449_v40 = vld [vmem:[%s744_s2] ss:$0 sm:$0xff]  ;;  %s644_s2 = scalar_lea.vmem %s440_s12, 64 }
  0x31   :  { %486 = vmatprep.subr.bf16.mxu0 %v562_v7  ;;  %522 = vmatprep.subr.bf16.mxu1 %v675_v0  ;;  %v471_v49 = vld [vmem:[%s746_s4] ss:$0 sm:$0xff]  ;;  %p645_p1 = scmp.ne.s32.totalorder %s440_s12, %s644_s2  ;;  %p650_p3 = scmp.lt.s32.totalorder %s644_s2, %s644_s2 }
  0x33   :  { %p651_p4 = por %p650_p3, %p649_p2 }
  0x34   :  { %487 = vmatpush3.bf16.msra.mxu0 %v563_v9  ;;  %523 = vmatpush3.bf16.msra.mxu1 %v575_v17 }
  0x35   :  { %488 = vmatprep.subr.bf16.mxu0 %v564_v10  ;;  %528 = vmatprep.subr.bf16.mxu1 %v675_v0  ;;  %p652_p5 = pnand %p651_p4, %p645_p1 }
  0x37   :  { %525 = vmatmul.mubr.msk.bf16.vlgmr.msra.gmra.mxu1 %vm234_vm1, %v66_v23 }
  0x38   :  { %489 = vmatpush3.bf16.msra.mxu0 %v565_v12  ;;  %529 = vmatpush3.bf16.msra.mxu1 %v576_v24 }
  0x39   :  { %490 = vmatprep.subr.bf16.mxu0 %v567_v13  ;;  %530 = vmatprep.subr.bf16.mxu1 %v675_v0 }
  0x3a   :  { %544 = vmatprep.mubr.msk.bf16.mxu1 %vm676_vm0, %v675_v0 }
  0x3c   :  { %491 = vmatpush3.bf16.msra.mxu0 %v568_v15  ;;  %531 = vmatpush3.bf16.msra.mxu1 %v577_v27 }
  0x3d   :  { %492 = vmatprep.subr.bf16.mxu0 %v570_v16  ;;  %532 = vmatprep.subr.bf16.mxu1 %v675_v0 }
  0x40   :  { %493 = vmatpush3.bf16.msra.mxu0 %v571_v21  ;;  %533 = vmatpush3.bf16.msra.mxu1 %v578_v29 }
  0x41   :  { %494 = vmatprep.subr.bf16.mxu0 %v573_v22  ;;  %534 = vmatprep.subr.bf16.mxu1 %v675_v0 }
  0x44   :  { %495 = vmatpush3.bf16.msra.mxu0 %v574_v25  ;;  %535 = vmatpush3.bf16.msra.mxu1 %v579_v30 }
  0x45   :  { %536 = vmatprep.subr.bf16.mxu1 %v675_v0 }
  0x47   :  { %271 = vmatmul.mubr.bf16.vlgmr.msra.gmra.mxu0 %v64_v28 }
  0x48   :  { %537 = vmatpush3.bf16.msra.mxu1 %v580_v31 }
  0x49   :  { %538 = vmatprep.subr.bf16.mxu1 %v675_v0 }
  0x4c   :  { %539 = vmatpush3.bf16.msra.mxu1 %v581_v32 }
  0x4d   :  { %540 = vmatprep.subr.bf16.mxu1 %v675_v0 }
  0x50   :  { %541 = vmatpush3.bf16.msra.mxu1 %v582_v33 }
  0x51   :  { %542 = vmatprep.subr.bf16.mxu1 %v675_v0 }
  0x54   :  { %543 = vmatpush3.bf16.msra.mxu1 %v583_v34 }
  0xf7   :  { %v312_v35 = vpop.f32.mrf.mxu1 }
  0xf9   :  { %v526_v36 = vpop.f32.mrf.mxu1 }
  0xfb   :  { %v315_v37 = vpop.f32.mrf.mxu1 }
  0xfd   :  { %v527_v38 = vpop.f32.mrf.mxu1 }
 0x107   :  { %v496_v39 = vpop.f32.mrf.mxu0 }
 0x109   :  { %v497_v41 = vpop.f32.mrf.mxu0 }
 0x10a   :  { %v498_v42 = vadd.f32 %v497_v41, %v496_v39 }
 0x10b   :  { %v499_v43 = vpop.f32.mrf.mxu0 }
 0x10c   :  { %v273_v44 = vadd.f32 %v498_v42, %v449_v40 }
 0x10d   :  { %v500_v45 = vpop.f32.mrf.mxu0 }
 0x10e   :  { %v313_v46 = vadd.f32 %v312_v35, %v273_v44 }
 0x110   :  { %v318_v47 = vmax.f32 %v313_v46, 0.0 }
 0x112   :  { %v319_v48 = vpack.c.bf16 %v318_v47, %v318_v47 }
 0x114   :  { %545 = vmatmul.mubr.bf16.vlgmr.msra.gmra.mxu1 %v319_v48 }
 0x1d4   :  { %v425_v50 = vpop.f32.mrf.mxu1 }
 0x1d5   :  { %v426_v51 = vadd.f32 %v471_v49, %v425_v50 }
 0x1d6   :  { %v546_v52 = vpop.f32.mrf.mxu1 }
 0x1d7   :  { %v431_v53 = vpack.c.bf16 %v426_v51, %v426_v51 }
 0x1d8   :  { %v428_v54 = vpop.f32.mrf.mxu1 }
 0x1d9   :  { %432 = vst [vmem:[#allocation8] sm:$0xf] %v431_v53 }
 0x1da   :  { %v547_v55 = vpop.f32.mrf.mxu1 }
 0x1db   :  { %655 = shalt.err (!%p652_p5)
}
 0x1dc   :  { %442 = dma.vmem_to_hbm [thread:$0]  %s440_s12, 64, %s747_s5, [#allocation4]  }
 0x1dd   :  { %668 = dma.done.wait [#allocation4], 64  }
 0x1de   :  { %669 = vsyncadd [#allocation4], 4294967232 }
 0x1df   :  { %446 = vsyncpa [#allocation3], 1 }
 0x1e0   :  { %447 = vsyncpa [#allocation6], 1 }
 0x1e1   :  { %448 = vsyncpa [#allocation4], 1 }

</bundles_post_ra>
